<compile_context>
chip_gen: v7x
topology: tpu7x:2x2x1
jax: 0.10.0
libtpu: 0.0.40
codegen_flags: <defaults>
</compile_context>

<pallas_src>
import functools

import jax
import jax.numpy as jnp
from jax.experimental import pallas as pl
from jax.experimental.pallas import tpu as pltpu

INPUT_DIM = 3
HIDDEN = 32
OUT = 2


def _fc_kernel(x_ref, w1_ref, b1_ref, w2t_ref, b2_ref, o_ref, *, negative_slope):
    # Feature-major tiles: batch is the (fast) lane axis.
    x = x_ref[...]                       # [INPUT_DIM, TB]
    w1 = w1_ref[...]                     # [HIDDEN, INPUT_DIM]

    # --- Layer 1: Linear(3 -> 32) as 3 broadcast-FMAs on the VPU.
    # K=3 would use 3/256 MXU rows and still pay full push/pop latency;
    # 3 outer-product FMAs keep the work in the plentiful VALU slots.
    h = b1_ref[...]                      # [HIDDEN, 1] -> broadcasts over lanes
    h = h + w1[:, 0:1] * x[0:1, :]       # [HIDDEN,1]*[1,TB] -> [HIDDEN,TB]
    h = h + w1[:, 1:2] * x[1:2, :]
    h = h + w1[:, 2:3] * x[2:3, :]

    # leaky_relu
    h = jnp.where(h >= 0.0, h, negative_slope * h)     # [HIDDEN, TB], f32

    # --- Layer 2: Linear(32 -> 2) as 2 VPU multiplies + sublane (XLU) reduces.
    w2t = w2t_ref[...]                   # [HIDDEN, OUT]
    rows = [
        jnp.sum(w2t[:, o:o + 1] * h, axis=0, keepdims=True)   # [1, TB]
        for o in range(OUT)
    ]
    y = jnp.concatenate(rows, axis=0) + b2_ref[...]            # [OUT, TB]
    o_ref[...] = y.astype(o_ref.dtype)   # lane-dense store, no masked vst


def fc_forward(x, w1, b1, w2t, b2, negative_slope, *, block_b=1024):
    """Forward pass of FC. x: [B, ...] with prod(trailing dims) == INPUT_DIM.

    Returns [B, OUT] (matching the PyTorch module's output layout)."""
    B = x.shape[0]
    x2d = x.reshape(B, -1)               # torch.flatten(x, start_dim=1)
    assert x2d.shape[1] == INPUT_DIM
    # Feature-major: batch on the lane axis (wrapper-side layout plumbing).
    x_fm = jnp.asarray(x2d, jnp.float32).T            # [INPUT_DIM, B]

    if B <= block_b:
        tb = B                           # single tile; full-dim block is legal
    else:
        assert block_b % 128 == 0, "batch tile must be lane-aligned (x128)"
        tb = block_b
    grid = (pl.cdiv(B, tb),)

    kernel = functools.partial(_fc_kernel, negative_slope=negative_slope)

    flops = 2 * B * (INPUT_DIM * HIDDEN + HIDDEN * OUT)
    bytes_accessed = 4 * (B * (INPUT_DIM + OUT)
                          + HIDDEN * (INPUT_DIM + 1) + OUT * (HIDDEN + 1))

    y_fm = pl.pallas_call(
        kernel,
        out_shape=jax.ShapeDtypeStruct((OUT, B), jnp.float32),
        grid_spec=pltpu.PrefetchScalarGridSpec(
            num_scalar_prefetch=0,
            grid=grid,
            in_specs=[
                pl.BlockSpec((INPUT_DIM, tb), lambda i: (0, i)),      # x tile
                pl.BlockSpec((HIDDEN, INPUT_DIM), lambda i: (0, 0)),  # w1 (resident)
                pl.BlockSpec((HIDDEN, 1), lambda i: (0, 0)),          # b1 (resident)
                pl.BlockSpec((HIDDEN, OUT), lambda i: (0, 0)),        # w2^T (resident)
                pl.BlockSpec((OUT, 1), lambda i: (0, 0)),             # b2 (resident)
            ],
            out_specs=pl.BlockSpec((OUT, tb), lambda i: (0, i)),      # lane-dense
        ),
        compiler_params=pltpu.CompilerParams(
            dimension_semantics=("parallel",),   # shard batch tiles across TCs
        ),
        cost_estimate=pl.CostEstimate(
            flops=flops, transcendentals=0, bytes_accessed=bytes_accessed),
    )(x_fm, w1, b1, w2t, b2)

    return y_fm.T                         # back to [B, OUT]


def init_params(key):
    """Deterministic init matching PyTorch nn.Linear defaults."""
    k1, k2, k3, k4 = jax.random.split(key, 4)
    bound1 = 1.0 / jnp.sqrt(float(INPUT_DIM))
    bound2 = 1.0 / jnp.sqrt(float(HIDDEN))
    w1 = jax.random.uniform(k1, (HIDDEN, INPUT_DIM), jnp.float32, -bound1, bound1)
    b1 = jax.random.uniform(k2, (HIDDEN, 1), jnp.float32, -bound1, bound1)
    w2t = jax.random.uniform(k3, (HIDDEN, OUT), jnp.float32, -bound2, bound2)
    b2 = jax.random.uniform(k4, (OUT, 1), jnp.float32, -bound2, bound2)
    return w1, b1, w2t, b2


if __name__ == "__main__":
    key = jax.random.PRNGKey(0)
    kx, kp = jax.random.split(key)

    B = 256
    negative_slope = 0.01

    # Input: [B, INPUT_DIM]; torch.flatten(x, start_dim=1) is identity here.
    x = jax.random.normal(kx, (B, INPUT_DIM), jnp.float32)
    w1, b1, w2t, b2 = init_params(kp)

    # block_b=128 exercises a 2-step pipelined (parallel) batch grid even at
    # this small demo size; production default is 1024-row tiles.
    out = fc_forward(x, w1, b1, w2t, b2, negative_slope, block_b=128)
    out = jax.block_until_ready(out)

    # Pure-JAX reference (batch-major, PyTorch semantics).
    h_ref = x @ w1.T + b1.reshape(1, HIDDEN)
    h_ref = jnp.where(h_ref >= 0.0, h_ref, negative_slope * h_ref)
    ref = h_ref @ w2t + b2.reshape(1, OUT)

    assert out.shape == (B, OUT)
    assert jnp.allclose(out, ref, atol=1e-5, rtol=1e-5), (
        float(jnp.max(jnp.abs(out - ref))))

    print("KERNEL_OK")
</pallas_src>

<mosaic_0001>
module attributes {stable_mosaic.version = 11 : i64} {
  func.func @_fc_kernel(%arg0: i32, %arg1: memref<3x128xf32, #tpu.memory_space<vmem>>, %arg2: memref<32x3xf32, #tpu.memory_space<vmem>>, %arg3: memref<32x1xf32, #tpu.memory_space<vmem>>, %arg4: memref<32x2xf32, #tpu.memory_space<vmem>>, %arg5: memref<2x1xf32, #tpu.memory_space<vmem>>, %arg6: memref<2x128xf32, #tpu.memory_space<vmem>>) attributes {dimension_semantics = [#tpu.dimension_semantics<parallel>], iteration_bounds = array<i64: 2>, scalar_prefetch = 0 : i64, scratch_operands = 0 : i64, tpu.core_type = #tpu.core_type<tc>, window_params = [{transform_indices = @transform_0, window_bounds = array<i64: 3, 128>}, {pipeline_mode = #tpu.pipeline_mode<synchronous>, transform_indices = @transform_1, window_bounds = array<i64: 32, 3>}, {pipeline_mode = #tpu.pipeline_mode<synchronous>, transform_indices = @transform_2, window_bounds = array<i64: 32, 1>}, {pipeline_mode = #tpu.pipeline_mode<synchronous>, transform_indices = @transform_3, window_bounds = array<i64: 32, 2>}, {pipeline_mode = #tpu.pipeline_mode<synchronous>, transform_indices = @transform_4, window_bounds = array<i64: 2, 1>}, {transform_indices = @transform_5, window_bounds = array<i64: 2, 128>}]} {
    %c0 = arith.constant 0 : index
    %c0_0 = arith.constant 0 : index
    %0 = vector.load %arg1[%c0, %c0_0] : memref<3x128xf32, #tpu.memory_space<vmem>>, vector<3x128xf32>
    %c0_1 = arith.constant 0 : index
    %c0_2 = arith.constant 0 : index
    %1 = vector.load %arg2[%c0_1, %c0_2] : memref<32x3xf32, #tpu.memory_space<vmem>>, vector<32x3xf32>
    %c0_3 = arith.constant 0 : index
    %c0_4 = arith.constant 0 : index
    %2 = vector.load %arg3[%c0_3, %c0_4] : memref<32x1xf32, #tpu.memory_space<vmem>>, vector<32x1xf32>
    %3 = vector.extract_strided_slice %1 {offsets = [0, 0], sizes = [32, 1], strides = [1, 1]} : vector<32x3xf32> to vector<32x1xf32>
    %4 = vector.extract_strided_slice %0 {offsets = [0, 0], sizes = [1, 128], strides = [1, 1]} : vector<3x128xf32> to vector<1x128xf32>
    %5 = vector.broadcast %3 : vector<32x1xf32> to vector<32x128xf32>
    %6 = vector.broadcast %4 : vector<1x128xf32> to vector<32x128xf32>
    %7 = arith.mulf %5, %6 : vector<32x128xf32>
    %8 = vector.broadcast %2 : vector<32x1xf32> to vector<32x128xf32>
    %9 = arith.addf %8, %7 : vector<32x128xf32>
    %10 = vector.extract_strided_slice %1 {offsets = [0, 1], sizes = [32, 1], strides = [1, 1]} : vector<32x3xf32> to vector<32x1xf32>
    %11 = vector.extract_strided_slice %0 {offsets = [1, 0], sizes = [1, 128], strides = [1, 1]} : vector<3x128xf32> to vector<1x128xf32>
    %12 = vector.broadcast %10 : vector<32x1xf32> to vector<32x128xf32>
    %13 = vector.broadcast %11 : vector<1x128xf32> to vector<32x128xf32>
    %14 = arith.mulf %12, %13 : vector<32x128xf32>
    %15 = arith.addf %9, %14 : vector<32x128xf32>
    %16 = vector.extract_strided_slice %1 {offsets = [0, 2], sizes = [32, 1], strides = [1, 1]} : vector<32x3xf32> to vector<32x1xf32>
    %17 = vector.extract_strided_slice %0 {offsets = [2, 0], sizes = [1, 128], strides = [1, 1]} : vector<3x128xf32> to vector<1x128xf32>
    %18 = vector.broadcast %16 : vector<32x1xf32> to vector<32x128xf32>
    %19 = vector.broadcast %17 : vector<1x128xf32> to vector<32x128xf32>
    %20 = arith.mulf %18, %19 : vector<32x128xf32>
    %21 = arith.addf %15, %20 : vector<32x128xf32>
    %cst = arith.constant 0.000000e+00 : f32
    %22 = vector.broadcast %cst : f32 to vector<32x128xf32>
    %23 = arith.cmpf oge, %21, %22 : vector<32x128xf32>
    %cst_5 = arith.constant 0.00999999977 : f32
    %24 = vector.broadcast %cst_5 : f32 to vector<32x128xf32>
    %25 = arith.mulf %24, %21 : vector<32x128xf32>
    %26 = arith.select %23, %21, %25 : vector<32x128xi1>, vector<32x128xf32>
    %c0_6 = arith.constant 0 : index
    %c0_7 = arith.constant 0 : index
    %27 = vector.load %arg4[%c0_6, %c0_7] : memref<32x2xf32, #tpu.memory_space<vmem>>, vector<32x2xf32>
    %28 = vector.extract_strided_slice %27 {offsets = [0, 0], sizes = [32, 1], strides = [1, 1]} : vector<32x2xf32> to vector<32x1xf32>
    %29 = vector.broadcast %28 : vector<32x1xf32> to vector<32x128xf32>
    %30 = arith.mulf %29, %26 : vector<32x128xf32>
    %cst_8 = arith.constant dense<0.000000e+00> : vector<128xf32>
    %31 = vector.multi_reduction <add>, %30, %cst_8 [0] : vector<32x128xf32> to vector<128xf32>
    %32 = vector.shape_cast %31 : vector<128xf32> to vector<1x128xf32>
    %33 = vector.extract_strided_slice %27 {offsets = [0, 1], sizes = [32, 1], strides = [1, 1]} : vector<32x2xf32> to vector<32x1xf32>
    %34 = vector.broadcast %33 : vector<32x1xf32> to vector<32x128xf32>
    %35 = arith.mulf %34, %26 : vector<32x128xf32>
    %cst_9 = arith.constant dense<0.000000e+00> : vector<128xf32>
    %36 = vector.multi_reduction <add>, %35, %cst_9 [0] : vector<32x128xf32> to vector<128xf32>
    %37 = vector.shape_cast %36 : vector<128xf32> to vector<1x128xf32>
    %38 = tpu.concatenate %32, %37 in 0 : vector<1x128xf32>, vector<1x128xf32> -> vector<2x128xf32>
    %c0_10 = arith.constant 0 : index
    %c0_11 = arith.constant 0 : index
    %39 = vector.load %arg5[%c0_10, %c0_11] : memref<2x1xf32, #tpu.memory_space<vmem>>, vector<2x1xf32>
    %40 = vector.broadcast %39 : vector<2x1xf32> to vector<2x128xf32>
    %41 = arith.addf %38, %40 : vector<2x128xf32>
    %c0_12 = arith.constant 0 : index
    %c0_13 = arith.constant 0 : index
    %42 = vector.load %arg6[%c0_12, %c0_13] : memref<2x128xf32, #tpu.memory_space<vmem>>, vector<2x128xf32>
    tpu.vector_store %arg6[%c0_12, %c0_13], %41 {strides = array<i32>} : memref<2x128xf32, #tpu.memory_space<vmem>>, vector<2x128xf32>,
    return
  }
  func.func @transform_0(%arg0: i32) -> (i32, i32) {
    %c0_i32 = arith.constant 0 : i32
    %c0_i32_0 = arith.constant 0 : i32
    return %c0_i32, %arg0 : i32, i32
  }
  func.func @transform_1(%arg0: i32) -> (i32, i32) {
    %c0_i32 = arith.constant 0 : i32
    %c0_i32_0 = arith.constant 0 : i32
    %c0_i32_1 = arith.constant 0 : i32
    return %c0_i32, %c0_i32_0 : i32, i32
  }
  func.func @transform_2(%arg0: i32) -> (i32, i32) {
    %c0_i32 = arith.constant 0 : i32
    %c0_i32_0 = arith.constant 0 : i32
    %c0_i32_1 = arith.constant 0 : i32
    return %c0_i32, %c0_i32_0 : i32, i32
  }
  func.func @transform_3(%arg0: i32) -> (i32, i32) {
    %c0_i32 = arith.constant 0 : i32
    %c0_i32_0 = arith.constant 0 : i32
    %c0_i32_1 = arith.constant 0 : i32
    return %c0_i32, %c0_i32_0 : i32, i32
  }
  func.func @transform_4(%arg0: i32) -> (i32, i32) {
    %c0_i32 = arith.constant 0 : i32
    %c0_i32_0 = arith.constant 0 : i32
    %c0_i32_1 = arith.constant 0 : i32
    return %c0_i32, %c0_i32_0 : i32, i32
  }
  func.func @transform_5(%arg0: i32) -> (i32, i32) {
    %c0_i32 = arith.constant 0 : i32
    %c0_i32_0 = arith.constant 0 : i32
    return %c0_i32, %arg0 : i32, i32
  }
}

</mosaic_0001>

<bundles_post_ra>
// kernel: tpu_custom_call.1
= control target key start
LH: loop header
LB: loop body
LE: loop exit
PB: predicated region body
PF: predicated region fallthrough
CT: control target
= control target key end

     0   :  { %10 = vsyncpa [#allocation3], 0  ;;  %s803_s0 = inlined_call_operand.vmem [shape: f32[3,256], index: 0, kind: input, shape index: {}]   ;;  %s804_s1 = inlined_call_operand.vmem [shape: f32[32,3], index: 1, kind: input, shape index: {}]   ;;  %s805_s2 = inlined_call_operand.vmem [shape: f32[32,1], index: 2, kind: input, shape index: {}]   ;;  %s806_s3 = inlined_call_operand.vmem [shape: f32[32,2], index: 3, kind: input, shape index: {}]   ;;  %s807_s4 = inlined_call_operand.vmem [shape: f32[2,1], index: 4, kind: input, shape index: {}]   ;;  %s808_s5 = inlined_call_operand.hbm [shape: f32[2,256], index: 5, kind: output, shape index: {}]  }
   0x1   :  { %12 = vsyncpa [#allocation3 + $0x1], 0  ;;  %s664_s18 = smov 0   ;;  %s666_s19 = smov 0  }
   0x2   :  { %s668_s20 = smov 0   ;;  %s670_s21 = smov 0  }
   0x3 LB: > { %s685_s22 = sadd.s32 4294967295, %s628_s21   ;;  %s498_s23 = sadd.s32 4294967294, %s628_s21   ;;  %s628_s21 = sphi %s670_s21, %s814_s21   ;;  %s624_s20 = sphi %s668_s20, %s813_s20   ;;  %s620_s19 = sphi %s666_s19, %s812_s19   ;;  %s616_s18 = sphi %s664_s18, %s811_s18  }
   0x4   : > { %s689_s24 = sadd.s32 1, %s628_s21   ;;  %s135_s25 = sadd.s32 1, %s624_s20 }
   0x5   : > { %s132_s26 = ssub.s32 %s628_s21, %s689_s24  ;;  %p145_p0 = scmp.ne.s32.totalorder %s624_s20, %s620_s19 }
   0x6   : > { %p133_p1 = scmp.eq.s32.totalorder %s132_s26, 0  ;;  %p146_p2 = scmp.eq.s32.totalorder %s685_s22, 1 }
   0x7   : > { %p151_p3 = scmp.ne.s32.totalorder %s620_s19, %s616_s18  ;;  %p152_p4 = scmp.eq.s32.totalorder %s498_s23, 1 }
   0x8   : > { %s700_s27 = scalar_select %p133_p1, %s624_s20, %s135_s25  }
   0x9   : > { %p702_p5 = por %p146_p2, %p145_p0  ;;  %p706_p6 = por %p152_p4, %p151_p3 }
   0xa   : > { %p501_p7 = scmp.ge.s32.totalorder %s628_s21, 1  ;;  %p189_p8 = scmp.lt.s32.totalorder %s628_s21, 3 }
   0xc   : > { %p190_p9 = pnand %p501_p7, %p189_p8 }
   0xd   : > { %v223_v0 = vld [vmem:[%s804_s1 + $0x10] sm:$0xff] (!%p190_p9)  ;;  %v221_v1 = vld [vmem:[%s804_s1] sm:$0xff] (!%p190_p9)  ;;  %v630_v2 = vmov (!%p190_p9), 0   ;;  %v222_v4 = vld [vmem:[%s804_s1 + $0x8] sm:$0xff] (!%p190_p9)  ;;  %v631_v6 = vmov (!%p190_p9), 1   ;;  %v632_v8 = vmov (!%p190_p9), 2   ;;  %v249_v23 = vlaneseq (!%p190_p9) }
   0xe   : > { %193 = sbr.rel (%p190_p9) target bundleno = 238 (0xee), region = 40  ;;  %551 = vset.pattern.permute.xlu1 (!%p190_p9), %v630_v2  ;;  %550 = vset.pattern.permute.xlu0 (!%p190_p9), %v630_v2  ;;  %v225_v3 = vld [vmem:[%s805_s2] sm:$0xff] (!%p190_p9)  ;;  %v226_v5 = vld [vmem:[%s805_s2 + $0x8] sm:$0xff] (!%p190_p9)  ;;  %v224_v7 = vld [vmem:[%s804_s1 + $0x18] sm:$0xff] (!%p190_p9)  ;;  %p216_p10 = scmp.lt.s32.totalorder (!%p190_p9), %s685_s22, 1  ;;  %vm415_vm4 = vcmask (!%p190_p9), 1040384  }
   0xf   : > { %241 = vperm.xlu1 (!%p190_p9), %551, %v223_v0   ;;  %231 = vperm.xlu0 (!%p190_p9), %550, %v221_v1   ;;  %v227_v9 = vld [vmem:[%s805_s2 + $0x10] sm:$0xff] (!%p190_p9)  ;;  %v228_v10 = vld [vmem:[%s805_s2 + $0x18] sm:$0xff] (!%p190_p9)  ;;  %v350_v11 = vld [vmem:[%s806_s3 + $0x8] sm:$0xff] (!%p190_p9)  ;;  %v250_v26 = vshrl.u32 (!%p190_p9), %v249_v23, 7  ;;  %s213_s26 = sand.u32 (!%p190_p9), 1, %s620_s19   ;;  %s505_s6 = sshll.u32 (!%p190_p9), %s685_s22, 5 }
  0x10   : > { %v349_v12 = vld [vmem:[%s806_s3] sm:$0xff] (!%p190_p9)  ;;  %v352_v13 = vld [vmem:[%s806_s3 + $0x18] sm:$0xff] (!%p190_p9)  ;;  %v351_v14 = vld [vmem:[%s806_s3 + $0x10] sm:$0xff] (!%p190_p9)  ;;  %s502_s30 = sshll.u32 (!%p190_p9), %s213_s26, 1  ;;  %s761_s11 = scalar_lea.hbm (!%p190_p9), %s808_s5, %s505_s6 }
  0x11   : > { %v417_v15 = vld [vmem:[%s807_s4] sm:$0x3] (!%p190_p9)  ;;  %v251_v28 = vsub.s32 (!%p190_p9), 0, %v250_v26  ;;  %v299_v32 = vsub.s32 (!%p190_p9), 1, %v250_v26  ;;  %v327_v36 = vsub.s32 (!%p190_p9), 2, %v250_v26  ;;  %s215_s7 = scalar_lea.vmem (!%p190_p9), [#allocation2], %s502_s30 }
  0x12   : > { %s439_s8 = sshll.u32 (!%p190_p9), %s215_s7, 4  ;;  %s426_s12 = scalar_lea.sflag (!%p190_p9), [#allocation3], %s213_s26  ;;  %s763_s8 = int_to_ptr.vmem [resolvable:$true] %s439_s8 }
  0x13   : > { %259 = vperm.xlu1 (!%p190_p9), %551, %v225_v3   ;;  %236 = vperm.xlu0 (!%p190_p9), %550, %v222_v4   ;;  %s566_s13 = scalar_lea.vmem (!%p190_p9), %s763_s8, 32 }
  0x14   : > { %p567_p11 = scmp.ne.s32.totalorder (!%p190_p9), %s763_s8, %s566_s13 }
  0x15   : > { %s217_s15 = scalar_select %p216_p10, %s685_s22, 1 }
  0x16   : > { %p568_p12 = pnand %p567_p11, %p702_p5  ;;  %s633_s22 = smov [#allocation2]  }
  0x17   : > { %552 = vset.pattern.permute.xlu1 %v631_v6  ;;  %264 = vperm.xlu0 %550, %v226_v5   ;;  %s503_s16 = sshll.u32 %s217_s15, 2  ;;  %s570_s14 = sshll.u32 %s633_s22, 4  ;;  %s571_s14 = int_to_ptr.vmem [resolvable:$false] %s570_s14 }
  0x18   : > { %282 = vperm.xlu1 %552, %v221_v1   ;;  %s219_s25 = scalar_lea.vmem %s803_s0, %s503_s16  ;;  %p569_p13 = pneg %p568_p12 }
  0x19   : > { %v220_v30 = vld [vmem:[%s219_s25] sm:$0x7]  ;;  %s572_s15 = scalar_lea.vmem %s571_s14, 64  ;;  %p573_p0 = scmp.lt.s32.totalorder %s763_s8, %s571_s14 }
  0x1a   : > { %v252_v31 = vrot.slane %v220_v30, %v251_v28  ;;  %v300_v37 = vrot.slane %v220_v30, %v299_v32  ;;  %v328_v39 = vrot.slane %v220_v30, %v327_v36  ;;  %p574_p1 = scmp.lt.s32.totalorder %s572_s15, %s566_s13 }
  0x1b   : > { %555 = vset.pattern.permute.xlu0 %v632_v8 }
  0x1c   : > { %553 = vset.pattern.permute.xlu1 %v630_v2  ;;  %314 = vperm.xlu0 %555, %v222_v4   ;;  %p575_p2 = por %p574_p1, %p573_p0 }
  0x1d   : > { %246 = vperm.xlu1 %553, %v224_v7  }
  0x1e   : > { %p576_p3 = pnand %p575_p2, %p569_p13 }
  0x20   : > { %318 = vperm.xlu0 %555, %v223_v0  }
  0x21   : > { %269 = vperm.xlu1 %553, %v227_v9  }
  0x24   : > { %558 = vset.pattern.permute.xlu0 %v631_v6 }
  0x25   : > { %554 = vset.pattern.permute.xlu1 %v632_v8  ;;  %286 = vperm.xlu0 %558, %v222_v4  }
  0x26   : > { %310 = vperm.xlu1 %554, %v221_v1  }
  0x29   : > { %290 = vperm.xlu0 %558, %v223_v0  }
  0x2a   : > { %556 = vset.pattern.permute.xlu1 %v630_v2 }
  0x2b   : > { %274 = vperm.xlu1 %556, %v228_v10  }
  0x2d   : > { %391 = vperm.xlu0 %558, %v350_v11  }
  0x2f   : > { %557 = vset.pattern.permute.xlu1 %v631_v6 }
  0x30   : > { %294 = vperm.xlu1 %557, %v224_v7  }
  0x31   : > { %562 = vset.pattern.permute.xlu0 %v630_v2 }
  0x32   : > { %355 = vperm.xlu0 %562, %v349_v12  }
  0x34   : > { %559 = vset.pattern.permute.xlu1 %v632_v8 }
  0x35   : > { %322 = vperm.xlu1 %559, %v224_v7  }
  0x36   : > { %370 = vperm.xlu0 %562, %v352_v13  }
  0x39   : > { %560 = vset.pattern.permute.xlu1 %v630_v2 }
  0x3a   : > { %360 = vperm.xlu1 %560, %v350_v11  }
  0x3e   : > { %561 = vset.pattern.permute.xlu1 %v631_v6 }
  0x3f   : > { %387 = vperm.xlu1 %561, %v349_v12  }
  0x43   : > { %563 = vset.pattern.permute.xlu1 %v630_v2 }
  0x44   : > { %365 = vperm.xlu1 %563, %v351_v14  }
  0x48   : > { %564 = vset.pattern.permute.xlu1 %v631_v6 }
  0x49   : > { %395 = vperm.xlu1 %564, %v351_v14  }
  0x4d   : > { %399 = vperm.xlu1 %564, %v352_v13  }
  0x51   : > { %565 = vset.pattern.permute.xlu1 %v630_v2 }
  0x52   : > { %420 = vperm.xlu1 %565, %v417_v15  }
  0x8e   : > { %v242_v16 = vpop.permute.xlu1 %241  ;;  %v232_v17 = vpop.permute.xlu0 %231 }
  0x8f   : > { %v253_v42 = vmul.f32 %v252_v31, %v232_v17  ;;  %v255_v45 = vmul.f32 %v252_v31, %v242_v16 }
  0x92   : > { %v260_v18 = vpop.permute.xlu1 %259  ;;  %v237_v19 = vpop.permute.xlu0 %236 }
  0x93   : > { %v254_v35 = vmul.f32 %v252_v31, %v237_v19  ;;  %v277_v49 = vadd.f32 %v260_v18, %v253_v42 }
  0x96   : > { %v265_v21 = vpop.permute.xlu0 %264 }
  0x97   : > { %v283_v20 = vpop.permute.xlu1 %282  ;;  %v278_v38 = vadd.f32 %v265_v21, %v254_v35 }
  0x98   : > { %v301_v44 = vmul.f32 %v300_v37, %v283_v20 }
  0x9a   : > { %v305_v55 = vadd.f32 %v301_v44, %v277_v49 }
  0x9b   : > { %v315_v24 = vpop.permute.xlu0 %314 }
  0x9c   : > { %v247_v22 = vpop.permute.xlu1 %246  ;;  %v330_v46 = vmul.f32 %v328_v39, %v315_v24 }
  0x9d   : > { %v256_v51 = vmul.f32 %v252_v31, %v247_v22 }
  0x9f   : > { %v319_v27 = vpop.permute.xlu0 %318 }
  0xa0   : > { %v270_v25 = vpop.permute.xlu1 %269  ;;  %v331_v56 = vmul.f32 %v328_v39, %v319_v27 }
  0xa1   : > { %v279_v52 = vadd.f32 %v270_v25, %v255_v45 }
  0xa4   : > { %v287_v33 = vpop.permute.xlu0 %286 }
  0xa5   : > { %v311_v29 = vpop.permute.xlu1 %310  ;;  %v302_v40 = vmul.f32 %v300_v37, %v287_v33 }
  0xa6   : > { %v329_v53 = vmul.f32 %v328_v39, %v311_v29 }
  0xa7   : > { %v306_v47 = vadd.f32 %v302_v40, %v278_v38 }
  0xa8   : > { %v291_v43 = vpop.permute.xlu0 %290  ;;  %v333_v61 = vadd.f32 %v329_v53, %v305_v55 }
  0xa9   : > { %v303_v48 = vmul.f32 %v300_v37, %v291_v43  ;;  %v334_v57 = vadd.f32 %v330_v46, %v306_v47 }
  0xaa   : > { %v275_v34 = vpop.permute.xlu1 %274  ;;  %v341_v4 = vmul.f32 0.01, %v333_v61  ;;  %vm337_vm1 = vcmp.ge.f32.partialorder %v333_v61, 0.0 }
  0xab   : > { %v307_v58 = vadd.f32 %v303_v48, %v279_v52  ;;  %v280_v59 = vadd.f32 %v275_v34, %v256_v51  ;;  %v342_v2 = vmul.f32 0.01, %v334_v57  ;;  %vm338_vm0 = vcmp.ge.f32.partialorder %v334_v57, 0.0 }
  0xac   : > { %v392_v62 = vpop.permute.xlu0 %391  ;;  %v345_v11 = vsel %vm337_vm1, %v333_v61, %v341_v4 }
  0xad   : > { %v335_v1 = vadd.f32 %v331_v56, %v307_v58  ;;  %v346_v6 = vsel %vm338_vm0, %v334_v57, %v342_v2 }
  0xae   : > { %v403_v24 = vmul.f32 %v392_v62, %v346_v6 }
  0xaf   : > { %v295_v41 = vpop.permute.xlu1 %294  ;;  %v343_v9 = vmul.f32 0.01, %v335_v1  ;;  %vm339_vm3 = vcmp.ge.f32.partialorder %v335_v1, 0.0 }
  0xb0   : > { %v304_v54 = vmul.f32 %v300_v37, %v295_v41 }
  0xb1   : > { %v356_v7 = vpop.permute.xlu0 %355  ;;  %v347_v16 = vsel %vm339_vm3, %v335_v1, %v343_v9 }
  0xb2   : > { %v308_v63 = vadd.f32 %v304_v54, %v280_v59  ;;  %v373_v12 = vmul.f32 %v356_v7, %v345_v11 }
  0xb4   : > { %v323_v50 = vpop.permute.xlu1 %322 }
  0xb5   : > { %v332_v60 = vmul.f32 %v328_v39, %v323_v50  ;;  %v371_v13 = vpop.permute.xlu0 %370 }
  0xb7   : > { %v336_v3 = vadd.f32 %v332_v60, %v308_v63 }
  0xb9   : > { %v361_v0 = vpop.permute.xlu1 %360  ;;  %v344_v8 = vmul.f32 0.01, %v336_v3  ;;  %vm340_vm2 = vcmp.ge.f32.partialorder %v336_v3, 0.0 }
  0xba   : > { %v374_v10 = vmul.f32 %v361_v0, %v346_v6 }
  0xbb   : > { %v348_v14 = vsel %vm340_vm2, %v336_v3, %v344_v8 }
  0xbc   : > { %v377_v17 = vadd.f32 %v374_v10, %v373_v12  ;;  %v376_v19 = vmul.f32 %v371_v13, %v348_v14 }
  0xbe   : > { %v388_v5 = vpop.permute.xlu1 %387 }
  0xbf   : > { %v402_v21 = vmul.f32 %v388_v5, %v345_v11 }
  0xc1   : > { %v406_v27 = vadd.f32 %v403_v24, %v402_v21 }
  0xc3   : > { %v366_v15 = vpop.permute.xlu1 %365 }
  0xc4   : > { %v375_v18 = vmul.f32 %v366_v15, %v347_v16 }
  0xc6   : > { %v378_v20 = vadd.f32 %v377_v17, %v375_v18 }
  0xc8   : > { %v379_v22 = vadd.f32 %v378_v20, %v376_v19  ;;  %v396_v23 = vpop.permute.xlu1 %395 }
  0xc9   : > { %v404_v25 = vmul.f32 %v396_v23, %v347_v16 }
  0xca   : > { %v380_v26 = vrot.slane %v379_v22, 4 }
  0xcb   : > { %v407_v30 = vadd.f32 %v406_v27, %v404_v25 }
  0xcc   : > { %v381_v28 = vadd.f32 %v380_v26, %v379_v22  ;;  %v400_v29 = vpop.permute.xlu1 %399 }
  0xcd   : > { %v405_v31 = vmul.f32 %v400_v29, %v348_v14 }
  0xce   : > { %v382_v32 = vrot.slane %v381_v28, 2 }
  0xcf   : > { %v408_v33 = vadd.f32 %v407_v30, %v405_v31 }
  0xd0   : > { %v383_v36 = vadd.f32 %v382_v32, %v381_v28 }
  0xd1   : > { %v409_v34 = vrot.slane %v408_v33, 4  ;;  %v421_v41 = vpop.permute.xlu1 %420 }
  0xd2   : > { %v384_v39 = vrot.slane %v383_v36, 1 }
  0xd3   : > { %v410_v35 = vadd.f32 %v409_v34, %v408_v33 }
  0xd4   : > { %v385_v42 = vadd.f32 %v384_v39, %v383_v36 }
  0xd5   : > { %v411_v37 = vrot.slane %v410_v35, 2 }
  0xd7   : > { %v412_v38 = vadd.f32 %v411_v37, %v410_v35 }
  0xd9   : > { %v413_v40 = vrot.slane %v412_v38, 1 }
  0xdb   : > { %v414_v43 = vadd.f32 %v413_v40, %v412_v38 }
  0xdd   : > { %v416_v44 = vsel %vm415_vm4, %v385_v42, %v414_v43 }
  0xde   : > { %v423_v45 = vadd.f32 %v421_v41, %v416_v44 }
  0xe0   : > { %424 = vst [vmem:[%s215_s7] sm:$0x3] %v423_v45 }
  0xe1   : > { %579 = shalt.err (!%p576_p3)
}
  0xe2   : > { %s580_s16 = scalar_lea.hbm %s761_s11, 32  ;;  %s584_s25 = scalar_lea.hbm %s808_s5, 64 }
  0xe3   : > { %p581_p4 = scmp.ne.s32.totalorder %s761_s11, %s580_s16  ;;  %p585_p9 = scmp.lt.u32.totalorder %s761_s11, %s808_s5 }
  0xe4   : > { %p586_p10 = scmp.lt.u32.totalorder %s584_s25, %s580_s16  ;;  %p588_p12 = scmp.lt.u32.totalorder %s580_s16, %s761_s11 }
  0xe5   : > { %p582_p7 = pnand %p581_p4, %p702_p5 }
  0xe6   : > { %p587_p11 = por %p586_p10, %p585_p9 }
  0xe7   : > { %p583_p8 = pneg %p582_p7 }
  0xe8   : > { %p589_p13 = por %p588_p12, %p587_p11 }
  0xea   : > { %p590_p0 = pnand %p589_p13, %p583_p8 }
  0xec   : > { %593 = shalt.err (!%p590_p0)
}
  0xed   : > { %508 = dma.vmem_to_hbm [thread:$0]  (%p702_p5), %s763_s8, 32, %s761_s11, %s426_s12  }
  0xee PF: > { %p514_p1 = scmp.ge.s32.totalorder %s628_s21, 2  ;;  %s451_s6 = sand.u32 1, %s616_s18  }
  0xef   : > { %s452_s7 = scalar_lea.sflag [#allocation3], %s451_s6 }
  0xf0   : > { %p511_p2 = pnand %p514_p1, %p706_p6 }
  0xf2   : > { %611 = dma.done.wait (!%p511_p2), %s452_s7, 32  }
  0xf3   : > { %613 = vsyncadd (!%p511_p2), %s452_s7, 4294967264  ;;  %p15_p3 = scmp.ge.s32.totalorder %s689_s24, 4   ;;  %s811_s18 = smov %s620_s19 }
  0xf4   : > { %s812_s19 = smov %s624_s20  ;;  %s813_s20 = smov %s700_s27 }
  0xf5   : > { %s814_s21 = smov %s689_s24  ;;  %17 = sbr.rel (!%p15_p3) target bundleno = 3 (0x3), region = 75 }
  0xfc   :  { %457 = vsyncpa [#allocation3], 1 }
  0xfd   :  { %459 = vsyncpa [#allocation3 + $0x1], 1 }

</bundles_post_ra>
